<compile_context>
chip_gen: v7x
topology: tpu7x:2x2x1
jax: 0.10.0
libtpu: 0.0.40
codegen_flags: <defaults>
</compile_context>

<pallas_src>
import functools

import jax
import jax.numpy as jnp
from jax.experimental import pallas as pl
from jax.experimental.pallas import tpu as pltpu

_LANE = 128  # TPU lane width; feature dims are padded to multiples of this.


def _round_up(x, m):
    return ((x + m - 1) // m) * m


def _gnn_fused_kernel(x_ref, *refs, num_layers):
    """Fused MLP stack for one row-tile of nodes.

    refs = (w0, b0, w1, b1, ..., w_{L-1}, b_{L-1}, o_ref).
    Intermediates never leave VMEM/vregs; only the final layer is stored.
    """
    o_ref = refs[-1]
    h = x_ref[...].astype(jnp.float32)
    for li in range(num_layers):  # static unroll over layers
        w = refs[2 * li][...]
        b = refs[2 * li + 1][...]
        h = jnp.dot(h, w.astype(jnp.float32), preferred_element_type=jnp.float32)
        h = h + b.astype(jnp.float32)
        if li < num_layers - 1:
            h = jnp.maximum(h, 0.0)  # ReLU between layers, none after the last
    o_ref[...] = h.astype(o_ref.dtype)


def gnn_forward(g, x, params, *, tm=128):
    """Fused forward pass: x -> [Linear+ReLU]*(L-1) -> Linear.

    `g` is accepted for signature parity with the PyTorch module but unused,
    exactly as in the reference forward().  Weights are stored [in, out] so
    the kernel computes x @ W + b.
    """
    del g  # unused by GNNModel.forward
    num_layers = len(params)
    n, in_feats = x.shape
    out_feats = params[-1][0].shape[1]

    # Row tile: keep it a multiple of 8 sublanes; pad node count to the tile.
    tm = max(8, min(tm, 512))
    n_pad = _round_up(max(n, tm), tm)

    # Feature dims padded to lane multiples (128) -> full MXU tiles and
    # unmasked lane-dense stores.
    dims = [in_feats] + [w.shape[1] for (w, _) in params]
    dims_pad = [_round_up(d, _LANE) for d in dims]

    x_p = jnp.zeros((n_pad, dims_pad[0]), x.dtype).at[:n, :in_feats].set(x)

    wb_inputs = []
    in_specs = [pl.BlockSpec((tm, dims_pad[0]), lambda i: (i, 0))]  # node tile
    for li, (w, b) in enumerate(params):
        di, do = dims_pad[li], dims_pad[li + 1]
        # Zero-pad: padded weight rows/cols and bias lanes are zero, so padded
        # lanes contribute nothing and carry zeros through the ReLUs.
        w_p = jnp.zeros((di, do), w.dtype).at[: w.shape[0], : w.shape[1]].set(w)
        b_p = jnp.zeros((1, do), b.dtype).at[0, : b.shape[0]].set(b)
        wb_inputs += [w_p, b_p]
        in_specs += [
            pl.BlockSpec((di, do), lambda i: (0, 0)),  # full weight, VMEM-resident
            pl.BlockSpec((1, do), lambda i: (0, 0)),   # bias row, VMEM-resident
        ]

    out_pad = dims_pad[-1]
    kernel = functools.partial(_gnn_fused_kernel, num_layers=num_layers)
    out = pl.pallas_call(
        kernel,
        out_shape=jax.ShapeDtypeStruct((n_pad, out_pad), x.dtype),
        grid_spec=pl.GridSpec(
            grid=(n_pad // tm,),
            in_specs=in_specs,
            out_specs=pl.BlockSpec((tm, out_pad), lambda i: (i, 0)),
        ),
        compiler_params=pltpu.CompilerParams(
            dimension_semantics=("parallel",),
            vmem_limit_bytes=64 * 1024 * 1024,
        ),
    )(x_p, *wb_inputs)

    # Strip row / lane padding.
    return out[:n, :out_feats]


def init_gnn_params(key, in_feats, hidden_feats, out_feats, num_layers):
    """Deterministic init matching nn.Linear shapes (weights stored [in, out])."""
    dims = [in_feats] + [hidden_feats] * (num_layers - 1) + [out_feats]
    params = []
    for li in range(num_layers):
        kw, kb, key = jax.random.split(key, 3)
        fan_in, fan_out = dims[li], dims[li + 1]
        bound = 1.0 / jnp.sqrt(fan_in)
        w = jax.random.uniform(kw, (fan_in, fan_out), jnp.float32, -bound, bound)
        b = jax.random.uniform(kb, (fan_out,), jnp.float32, -bound, bound)
        params.append((w, b))
    return params


if __name__ == "__main__":
    key = jax.random.PRNGKey(0)
    k_x, k_p = jax.random.split(key)

    # Small shapes consistent with the module; 256 nodes -> 2 parallel row
    # tiles of 128 so the grid axis actually shards across TensorCores.
    num_nodes, in_feats, hidden_feats, out_feats, num_layers = 256, 32, 64, 16, 3

    x = jax.random.normal(k_x, (num_nodes, in_feats), jnp.float32)
    g = jnp.ones((num_nodes, num_nodes), jnp.float32)  # dummy graph (unused)
    params = init_gnn_params(k_p, in_feats, hidden_feats, out_feats, num_layers)

    out = gnn_forward(g, x, params)
    out = jax.block_until_ready(out)

    # Reference check in plain JAX (same semantics as GNNModel.forward).
    ref = x
    for w, b in params[:-1]:
        ref = jnp.maximum(
            jnp.dot(ref, w, preferred_element_type=jnp.float32) + b, 0.0
        )
    ref = jnp.dot(ref, params[-1][0], preferred_element_type=jnp.float32) + params[-1][1]

    assert out.shape == (num_nodes, out_feats)
    assert jnp.allclose(out, ref, atol=1e-4, rtol=1e-4), (
        float(jnp.max(jnp.abs(out - ref)))
    )

    print("KERNEL_OK")
</pallas_src>

<mosaic_0001>
module attributes {stable_mosaic.version = 11 : i64} {
  func.func @_gnn_fused_kernel(%arg0: i32, %arg1: memref<128x128xf32, #tpu.memory_space<vmem>>, %arg2: memref<128x128xf32, #tpu.memory_space<vmem>>, %arg3: memref<1x128xf32, #tpu.memory_space<vmem>>, %arg4: memref<128x128xf32, #tpu.memory_space<vmem>>, %arg5: memref<1x128xf32, #tpu.memory_space<vmem>>, %arg6: memref<128x128xf32, #tpu.memory_space<vmem>>, %arg7: memref<1x128xf32, #tpu.memory_space<vmem>>, %arg8: memref<128x128xf32, #tpu.memory_space<vmem>>) attributes {dimension_semantics = [#tpu.dimension_semantics<parallel>], iteration_bounds = array<i64: 2>, scalar_prefetch = 0 : i64, scratch_operands = 0 : i64, tpu.core_type = #tpu.core_type<tc>, window_params = [{transform_indices = @transform_0, window_bounds = array<i64: 128, 128>}, {pipeline_mode = #tpu.pipeline_mode<synchronous>, transform_indices = @transform_1, window_bounds = array<i64: 128, 128>}, {pipeline_mode = #tpu.pipeline_mode<synchronous>, transform_indices = @transform_2, window_bounds = array<i64: 1, 128>}, {pipeline_mode = #tpu.pipeline_mode<synchronous>, transform_indices = @transform_3, window_bounds = array<i64: 128, 128>}, {pipeline_mode = #tpu.pipeline_mode<synchronous>, transform_indices = @transform_4, window_bounds = array<i64: 1, 128>}, {pipeline_mode = #tpu.pipeline_mode<synchronous>, transform_indices = @transform_5, window_bounds = array<i64: 128, 128>}, {pipeline_mode = #tpu.pipeline_mode<synchronous>, transform_indices = @transform_6, window_bounds = array<i64: 1, 128>}, {transform_indices = @transform_7, window_bounds = array<i64: 128, 128>}]} {
    %c0 = arith.constant 0 : index
    %c0_0 = arith.constant 0 : index
    %0 = vector.load %arg1[%c0, %c0_0] : memref<128x128xf32, #tpu.memory_space<vmem>>, vector<128x128xf32>
    %c0_1 = arith.constant 0 : index
    %c0_2 = arith.constant 0 : index
    %1 = vector.load %arg2[%c0_1, %c0_2] : memref<128x128xf32, #tpu.memory_space<vmem>>, vector<128x128xf32>
    %c0_3 = arith.constant 0 : index
    %c0_4 = arith.constant 0 : index
    %2 = vector.load %arg3[%c0_3, %c0_4] : memref<1x128xf32, #tpu.memory_space<vmem>>, vector<1x128xf32>
    %cst = arith.constant dense<0.000000e+00> : vector<128x128xf32>
    %3 = tpu.matmul %0, %1, %cst {dimension_numbers = #tpu.dot_dimension_numbers<[1], [0], [0], [1], [0, 0, 1, 1], [], []>} : vector<128x128xf32>, vector<128x128xf32>, vector<128x128xf32> -> vector<128x128xf32>
    %4 = vector.broadcast %2 : vector<1x128xf32> to vector<128x128xf32>
    %5 = arith.addf %3, %4 : vector<128x128xf32>
    %cst_5 = arith.constant 0.000000e+00 : f32
    %6 = vector.broadcast %cst_5 : f32 to vector<128x128xf32>
    %7 = arith.maximumf %5, %6 : vector<128x128xf32>
    %c0_6 = arith.constant 0 : index
    %c0_7 = arith.constant 0 : index
    %8 = vector.load %arg4[%c0_6, %c0_7] : memref<128x128xf32, #tpu.memory_space<vmem>>, vector<128x128xf32>
    %c0_8 = arith.constant 0 : index
    %c0_9 = arith.constant 0 : index
    %9 = vector.load %arg5[%c0_8, %c0_9] : memref<1x128xf32, #tpu.memory_space<vmem>>, vector<1x128xf32>
    %cst_10 = arith.constant dense<0.000000e+00> : vector<128x128xf32>
    %10 = tpu.matmul %7, %8, %cst_10 {dimension_numbers = #tpu.dot_dimension_numbers<[1], [0], [0], [1], [0, 0, 1, 1], [], []>} : vector<128x128xf32>, vector<128x128xf32>, vector<128x128xf32> -> vector<128x128xf32>
    %11 = vector.broadcast %9 : vector<1x128xf32> to vector<128x128xf32>
    %12 = arith.addf %10, %11 : vector<128x128xf32>
    %cst_11 = arith.constant 0.000000e+00 : f32
    %13 = vector.broadcast %cst_11 : f32 to vector<128x128xf32>
    %14 = arith.maximumf %12, %13 : vector<128x128xf32>
    %c0_12 = arith.constant 0 : index
    %c0_13 = arith.constant 0 : index
    %15 = vector.load %arg6[%c0_12, %c0_13] : memref<128x128xf32, #tpu.memory_space<vmem>>, vector<128x128xf32>
    %c0_14 = arith.constant 0 : index
    %c0_15 = arith.constant 0 : index
    %16 = vector.load %arg7[%c0_14, %c0_15] : memref<1x128xf32, #tpu.memory_space<vmem>>, vector<1x128xf32>
    %cst_16 = arith.constant dense<0.000000e+00> : vector<128x128xf32>
    %17 = tpu.matmul %14, %15, %cst_16 {dimension_numbers = #tpu.dot_dimension_numbers<[1], [0], [0], [1], [0, 0, 1, 1], [], []>} : vector<128x128xf32>, vector<128x128xf32>, vector<128x128xf32> -> vector<128x128xf32>
    %18 = vector.broadcast %16 : vector<1x128xf32> to vector<128x128xf32>
    %19 = arith.addf %17, %18 : vector<128x128xf32>
    %c0_17 = arith.constant 0 : index
    %c0_18 = arith.constant 0 : index
    %20 = vector.load %arg8[%c0_17, %c0_18] : memref<128x128xf32, #tpu.memory_space<vmem>>, vector<128x128xf32>
    tpu.vector_store %arg8[%c0_17, %c0_18], %19 {strides = array<i32>} : memref<128x128xf32, #tpu.memory_space<vmem>>, vector<128x128xf32>,
    return
  }
  func.func @transform_0(%arg0: i32) -> (i32, i32) {
    %c0_i32 = arith.constant 0 : i32
    %c0_i32_0 = arith.constant 0 : i32
    return %arg0, %c0_i32 : i32, i32
  }
  func.func @transform_1(%arg0: i32) -> (i32, i32) {
    %c0_i32 = arith.constant 0 : i32
    %c0_i32_0 = arith.constant 0 : i32
    %c0_i32_1 = arith.constant 0 : i32
    return %c0_i32, %c0_i32_0 : i32, i32
  }
  func.func @transform_2(%arg0: i32) -> (i32, i32) {
    %c0_i32 = arith.constant 0 : i32
    %c0_i32_0 = arith.constant 0 : i32
    %c0_i32_1 = arith.constant 0 : i32
    return %c0_i32, %c0_i32_0 : i32, i32
  }
  func.func @transform_3(%arg0: i32) -> (i32, i32) {
    %c0_i32 = arith.constant 0 : i32
    %c0_i32_0 = arith.constant 0 : i32
    %c0_i32_1 = arith.constant 0 : i32
    return %c0_i32, %c0_i32_0 : i32, i32
  }
  func.func @transform_4(%arg0: i32) -> (i32, i32) {
    %c0_i32 = arith.constant 0 : i32
    %c0_i32_0 = arith.constant 0 : i32
    %c0_i32_1 = arith.constant 0 : i32
    return %c0_i32, %c0_i32_0 : i32, i32
  }
  func.func @transform_5(%arg0: i32) -> (i32, i32) {
    %c0_i32 = arith.constant 0 : i32
    %c0_i32_0 = arith.constant 0 : i32
    %c0_i32_1 = arith.constant 0 : i32
    return %c0_i32, %c0_i32_0 : i32, i32
  }
  func.func @transform_6(%arg0: i32) -> (i32, i32) {
    %c0_i32 = arith.constant 0 : i32
    %c0_i32_0 = arith.constant 0 : i32
    %c0_i32_1 = arith.constant 0 : i32
    return %c0_i32, %c0_i32_0 : i32, i32
  }
  func.func @transform_7(%arg0: i32) -> (i32, i32) {
    %c0_i32 = arith.constant 0 : i32
    %c0_i32_0 = arith.constant 0 : i32
    return %arg0, %c0_i32 : i32, i32
  }
}

</mosaic_0001>

<bundles_post_ra>
// kernel: tpu_custom_call.1
= control target key start
LH: loop header
LB: loop body
LE: loop exit
PB: predicated region body
PF: predicated region fallthrough
CT: control target
= control target key end

     0   :  { %12 = vsyncpa [#allocation3], 0  ;;  %s2360_s0 = inlined_call_operand.hbm [shape: f32[256,128], index: 0, kind: input, shape index: {}]   ;;  %s2361_s1 = inlined_call_operand.hbm [shape: f32[128,128], index: 1, kind: input, shape index: {}]   ;;  %s2362_s2 = inlined_call_operand.hbm [shape: f32[1,128], index: 2, kind: input, shape index: {}]   ;;  %s2363_s3 = inlined_call_operand.hbm [shape: f32[128,128], index: 3, kind: input, shape index: {}]   ;;  %s2364_s4 = inlined_call_operand.hbm [shape: f32[1,128], index: 4, kind: input, shape index: {}]   ;;  %s2365_s5 = inlined_call_operand.hbm [shape: f32[128,128], index: 5, kind: input, shape index: {}]   ;;  %s2366_s6 = inlined_call_operand.hbm [shape: f32[1,128], index: 6, kind: input, shape index: {}]   ;;  %s2367_s7 = inlined_call_operand.hbm [shape: f32[256,128], index: 7, kind: output, shape index: {}]  }
   0x1   :  { %14 = vsyncpa [#allocation3 + $0x1], 0 }
   0x2   :  { %15 = vsyncpa [#allocation6], 0 }
   0x3   :  { %16 = vsyncpa [#allocation9], 0 }
   0x4   :  { %17 = vsyncpa [#allocation12], 0 }
   0x5   :  { %18 = vsyncpa [#allocation4], 0 }
   0x6   :  { %20 = vsyncpa [#allocation4 + $0x1], 0  ;;  %s1940_s24 = smov 0   ;;  %s1942_s25 = smov 0  }
   0x7   :  { %s1944_s26 = smov 0   ;;  %s1946_s27 = smov 0  }
   0x8 LB: > { %s1888_s28 = smov [#allocation5]   ;;  %s1961_s30 = sadd.s32 4294967295, %s1886_s27   ;;  %s1886_s27 = sphi %s1946_s27, %s2395_s27   ;;  %s1882_s26 = sphi %s1944_s26, %s2394_s26   ;;  %s1878_s25 = sphi %s1942_s25, %s2393_s25   ;;  %s1874_s24 = sphi %s1940_s24, %s2392_s24  }
   0x9   : > { %s221_s29 = sshll.u32 %s1888_s28, 4  ;;  %p1093_p0 = scmp.ge.s32.totalorder %s1886_s27, 1  ;;  %s1966_s29 = int_to_ptr.vmem [resolvable:$true] %s221_s29 }
   0xa   : > { %p2368_p1 = scmp.eq.s32.totalorder %s1961_s30, 0  ;;  %p209_p2 = scmp.lt.s32.totalorder %s1886_s27, 3 }
   0xb   : > { %s1889_s9 = smov [#allocation8]   ;;  %s1890_s12 = smov [#allocation11]  }
   0xc   : > { %p1968_p3 = pnand %p1093_p0, %p209_p2  ;;  %s245_s10 = sshll.u32 %s1889_s9, 4  ;;  %s1981_s10 = int_to_ptr.vmem [resolvable:$true] %s245_s10 }
   0xd   : > { %s269_s13 = sshll.u32 %s1890_s12, 4  ;;  %s1610_s16 = scalar_lea.hbm %s2361_s1, 2048  ;;  %s1983_s13 = int_to_ptr.vmem [resolvable:$true] %s269_s13 }
   0xe   : > { %s2372_s8 = scalar_select %p1968_p3, 1, 0 }
   0xf   : > { %p1527_p5 = pneg %p1968_p3  ;;  %p1611_p7 = scmp.ne.s32.totalorder %s2361_s1, %s1610_s16 }
  0x10   : > { %p1617_p11 = scmp.lt.u32.totalorder %s1610_s16, %s2361_s1 }
  0x11   : > { %p1977_p6 = pnand %p1527_p5, %p2368_p1 }
  0x13   : > { %p1993_p8 = pneg %p1977_p6 }
  0x15   : > { %p1613_p9 = pnand %p1993_p8, %p1611_p7 }
  0x17   : > { %p1614_p10 = pneg %p1613_p9 }
  0x19   : > { %p1619_p12 = pnand %p1617_p11, %p1614_p10 }
  0x1b   : > { %1622 = shalt.err (!%p1619_p12)
}
  0x1c   : > { %s1623_s22 = scalar_lea.vmem %s1966_s29, 2048  ;;  %p1631_p5 = scmp.lt.s32.totalorder %s1966_s29, %s1966_s29 }
  0x1d   : > { %p1624_p13 = scmp.ne.s32.totalorder %s1966_s29, %s1623_s22  ;;  %p1632_p4 = scmp.lt.s32.totalorder %s1623_s22, %s1623_s22 }
  0x1f   : > { %p1626_p0 = pnand %p1624_p13, %p1993_p8  ;;  %p1633_p7 = por %p1632_p4, %p1631_p5 }
  0x21   : > { %p1627_p2 = pneg %p1626_p0 }
  0x23   : > { %p1634_p9 = pnand %p1633_p7, %p1627_p2 }
  0x25   : > { %1637 = shalt.err (!%p1634_p9)
}
  0x26   : > { %s2370_s23 = smov 128   ;;  %s1892_s28 = smov 8  }
  0x27   : > { %1530 = dma.hbm_to_vmem [thread:$0]  (!%p1977_p6), %s2361_s1, 2048, %s1966_s29, [#allocation6], %s2370_s23, %s2370_s23, %s1892_s28  }
  0x28   : > { %s1638_s16 = scalar_lea.hbm %s2363_s3, 2048 }
  0x29   : > { %p1639_p4 = scmp.ne.s32.totalorder %s2363_s3, %s1638_s16  ;;  %p1645_p12 = scmp.lt.u32.totalorder %s1638_s16, %s2363_s3 }
  0x2b   : > { %p1641_p10 = pnand %p1639_p4, %p1993_p8 }
  0x2d   : > { %p1642_p11 = pneg %p1641_p10 }
  0x2f   : > { %p1647_p13 = pnand %p1645_p12, %p1642_p11 }
  0x31   : > { %1650 = shalt.err (!%p1647_p13)
}
  0x32   : > { %s1651_s29 = scalar_lea.vmem %s1981_s10, 2048  ;;  %p1659_p7 = scmp.lt.s32.totalorder %s1981_s10, %s1981_s10 }
  0x33   : > { %p1652_p0 = scmp.ne.s32.totalorder %s1981_s10, %s1651_s29  ;;  %p1660_p9 = scmp.lt.s32.totalorder %s1651_s29, %s1651_s29 }
  0x35   : > { %p1654_p2 = pnand %p1652_p0, %p1993_p8  ;;  %p1661_p4 = por %p1660_p9, %p1659_p7 }
  0x37   : > { %p1655_p5 = pneg %p1654_p2 }
  0x39   : > { %p1662_p10 = pnand %p1661_p4, %p1655_p5 }
  0x3b   : > { %1665 = shalt.err (!%p1662_p10)
}
  0x3c   : > { %1536 = dma.hbm_to_vmem [thread:$0]  (!%p1977_p6), %s2363_s3, 2048, %s1981_s10, [#allocation9], %s2370_s23, %s2370_s23, %s1892_s28  }
  0x3d   : > { %s1666_s15 = scalar_lea.hbm %s2365_s5, 2048 }
  0x3e   : > { %p1667_p11 = scmp.ne.s32.totalorder %s2365_s5, %s1666_s15  ;;  %p1673_p0 = scmp.lt.u32.totalorder %s1666_s15, %s2365_s5 }
  0x40   : > { %p1669_p12 = pnand %p1667_p11, %p1993_p8 }
  0x42   : > { %p1670_p13 = pneg %p1669_p12 }
  0x44   : > { %p1675_p2 = pnand %p1673_p0, %p1670_p13 }
  0x46   : > { %1678 = shalt.err (!%p1675_p2)
}
  0x47   : > { %s1679_s10 = scalar_lea.vmem %s1983_s13, 2048  ;;  %p1687_p4 = scmp.lt.s32.totalorder %s1983_s13, %s1983_s13 }
  0x48   : > { %p1680_p5 = scmp.ne.s32.totalorder %s1983_s13, %s1679_s10  ;;  %p1688_p10 = scmp.lt.s32.totalorder %s1679_s10, %s1679_s10 }
  0x4a   : > { %p1682_p7 = pnand %p1680_p5, %p1993_p8  ;;  %p1689_p11 = por %p1688_p10, %p1687_p4 }
  0x4c   : > { %p1683_p9 = pneg %p1682_p7 }
  0x4e   : > { %p1690_p12 = pnand %p1689_p11, %p1683_p9 }
  0x50   : > { %1693 = shalt.err (!%p1690_p12)
}
  0x51   : > { %1542 = dma.hbm_to_vmem [thread:$0]  (!%p1977_p6), %s2365_s5, 2048, %s1983_s13, [#allocation12], %s2370_s23, %s2370_s23, %s1892_s28  }
  0x52   : > { %s1893_s22 = smov [#allocation7]   ;;  %s1894_s12 = smov [#allocation10]  }
  0x53   : > { %s235_s9 = sshll.u32 %s1893_s22, 4  ;;  %s259_s14 = sshll.u32 %s1894_s12, 4  ;;  %s236_s9 = int_to_ptr.vmem [resolvable:$true] %s235_s9  ;;  %s260_s14 = int_to_ptr.vmem [resolvable:$true] %s259_s14 }
  0x54   : > { %s1694_s17 = scalar_lea.hbm %s2362_s2, 16 }
  0x55   : > { %p1695_p13 = scmp.ne.s32.totalorder %s2362_s2, %s1694_s17  ;;  %p1701_p5 = scmp.lt.u32.totalorder %s1694_s17, %s2362_s2 }
  0x57   : > { %p1697_p0 = pnand %p1695_p13, %p1993_p8 }
  0x59   : > { %p1698_p2 = pneg %p1697_p0 }
  0x5b   : > { %p1703_p7 = pnand %p1701_p5, %p1698_p2 }
  0x5d   : > { %1706 = shalt.err (!%p1703_p7)
}
  0x5e   : > { %s1707_s13 = scalar_lea.vmem %s236_s9, 16  ;;  %s1714_s29 = scalar_lea.vmem %s236_s9, 32 }
  0x5f   : > { %p1708_p9 = scmp.ne.s32.totalorder %s236_s9, %s1707_s13  ;;  %p1715_p11 = scmp.lt.s32.totalorder %s236_s9, %s236_s9 }
  0x60   : > { %p1716_p12 = scmp.lt.s32.totalorder %s1714_s29, %s1707_s13 }
  0x61   : > { %p1710_p4 = pnand %p1708_p9, %p1993_p8 }
  0x62   : > { %p1717_p1 = por %p1716_p12, %p1715_p11 }
  0x63   : > { %p1711_p10 = pneg %p1710_p4 }
  0x65   : > { %p1718_p3 = pnand %p1717_p1, %p1711_p10 }
  0x67   : > { %1721 = shalt.err (!%p1718_p3)
}
  0x68   : > { %1533 = dma.hbm_to_vmem [thread:$0]  (!%p1977_p6), %s2362_s2, 16, %s236_s9, [#allocation6]  }
  0x69   : > { %s1722_s17 = scalar_lea.hbm %s2364_s4, 16 }
  0x6a   : > { %p1723_p13 = scmp.ne.s32.totalorder %s2364_s4, %s1722_s17  ;;  %p1729_p3 = scmp.lt.u32.totalorder %s1722_s17, %s2364_s4 }
  0x6c   : > { %p1725_p0 = pnand %p1723_p13, %p1993_p8 }
  0x6e   : > { %p1726_p1 = pneg %p1725_p0 }
  0x70   : > { %p1731_p2 = pnand %p1729_p3, %p1726_p1 }
  0x72   : > { %1734 = shalt.err (!%p1731_p2)
}
  0x73   : > { %s1735_s13 = scalar_lea.vmem %s260_s14, 16  ;;  %s1742_s9 = scalar_lea.vmem %s260_s14, 32 }
  0x74   : > { %p1736_p5 = scmp.ne.s32.totalorder %s260_s14, %s1735_s13  ;;  %p1743_p4 = scmp.lt.s32.totalorder %s260_s14, %s260_s14 }
  0x75   : > { %p1744_p10 = scmp.lt.s32.totalorder %s1742_s9, %s1735_s13 }
  0x76   : > { %p1738_p7 = pnand %p1736_p5, %p1993_p8 }
  0x77   : > { %p1745_p11 = por %p1744_p10, %p1743_p4 }
  0x78   : > { %p1739_p9 = pneg %p1738_p7 }
  0x7a   : > { %p1746_p12 = pnand %p1745_p11, %p1739_p9 }
  0x7c   : > { %1749 = shalt.err (!%p1746_p12)
}
  0x7d   : > { %1539 = dma.hbm_to_vmem [thread:$0]  (!%p1977_p6), %s2364_s4, 16, %s260_s14, [#allocation9]  }
  0x7e   : > { %s1895_s12 = smov [#allocation13]   ;;  %s1750_s18 = scalar_lea.hbm %s2366_s6, 16 }
  0x7f   : > { %s283_s15 = sshll.u32 %s1895_s12, 4  ;;  %p1751_p13 = scmp.ne.s32.totalorder %s2366_s6, %s1750_s18  ;;  %s284_s15 = int_to_ptr.vmem [resolvable:$true] %s283_s15 }
  0x80   : > { %p1757_p3 = scmp.lt.u32.totalorder %s1750_s18, %s2366_s6 }
  0x81   : > { %p1753_p0 = pnand %p1751_p13, %p1993_p8 }
  0x83   : > { %p1754_p1 = pneg %p1753_p0 }
  0x85   : > { %p1759_p2 = pnand %p1757_p3, %p1754_p1 }
  0x87   : > { %1762 = shalt.err (!%p1759_p2)
}
  0x88   : > { %s1763_s14 = scalar_lea.vmem %s284_s15, 16  ;;  %s1770_s9 = scalar_lea.vmem %s284_s15, 32 }
  0x89   : > { %p1764_p5 = scmp.ne.s32.totalorder %s284_s15, %s1763_s14  ;;  %p1771_p4 = scmp.lt.s32.totalorder %s284_s15, %s284_s15 }
  0x8a   : > { %p1772_p10 = scmp.lt.s32.totalorder %s1770_s9, %s1763_s14 }
  0x8b   : > { %p1766_p7 = pnand %p1764_p5, %p1993_p8 }
  0x8c   : > { %p1773_p11 = por %p1772_p10, %p1771_p4 }
  0x8d   : > { %p1767_p9 = pneg %p1766_p7 }
  0x8f   : > { %p1774_p12 = pnand %p1773_p11, %p1767_p9 }
  0x91   : > { %1777 = shalt.err (!%p1774_p12)
}
  0x92   : > { %1545 = dma.hbm_to_vmem [thread:$0]  (!%p1977_p6), %s2366_s6, 16, %s284_s15, [#allocation12]  }
  0x93   : > { %s1092_s19 = sadd.s32 4294967294, %s1886_s27   ;;  %s2125_s11 = sadd.s32 1, %s1886_s27  }
  0x94   : > { %s30_s12 = ssub.s32 %s1886_s27, %s2125_s11  ;;  %s33_s16 = sadd.s32 1, %s1882_s26 }
  0x95   : > { %p31_p8 = scmp.eq.s32.totalorder %s30_s12, 0  ;;  %p40_p13 = scmp.ne.s32.totalorder %s1882_s26, %s1878_s25 }
  0x96   : > { %p41_p0 = scmp.eq.s32.totalorder %s1886_s27, 0  ;;  %p46_p1 = scmp.ne.s32.totalorder %s1878_s25, %s1874_s24 }
  0x97   : > { %s2136_s17 = scalar_select %p31_p8, %s1882_s26, %s33_s16  }
  0x98   : > { %p2138_p3 = por %p41_p0, %p40_p13  ;;  %p2376_p2 = scmp.eq.s32.totalorder %s1961_s30, 0 }
  0x99   : > { %p196_p5 = scmp.eq.s32.totalorder %s1961_s30, 1  ;;  %p202_p7 = scmp.eq.s32.totalorder %s1092_s19, 1 }
  0x9a   : > { %p2144_p6 = por %p2376_p2, %p46_p1  ;;  %p1560_p9 = scmp.lt.s32.totalorder %s1886_s27, 2 }
  0x9b   : > { %s294_s20 = sand.u32 1, %s1882_s26   ;;  %p2151_p4 = por %p196_p5, %p40_p13 }
  0x9c   : > { %p2155_p10 = por %p202_p7, %p46_p1  ;;  %s1101_s13 = sshll.u32 %s294_s20, 7 }
  0x9d   : > { %s2378_s10 = scalar_select %p2151_p4, 1, 0 }
  0x9e   : > { %s2379_s21 = scalar_select %p2155_p10, 1, 0 }
  0x9f   : > { %s1121_s14 = sshll.u32 %s1886_s27, 11  ;;  %s298_s19 = scalar_lea.vmem [#allocation2], %s1101_s13 }
  0xa0   : > { %s2163_s22 = scalar_lea.hbm %s2360_s0, %s1121_s14  ;;  %s305_s12 = sshll.u32 %s298_s19, 4  ;;  %s2165_s12 = int_to_ptr.vmem [resolvable:$true] %s305_s12 }
  0xa1   : > { %p2169_p11 = pnand %p1560_p9, %p2138_p3  ;;  %s2173_s23 = scalar_lea.sflag [#allocation3], %s294_s20 }
  0xa2   : > { %s1778_s9 = scalar_lea.hbm %s2163_s22, 2048  ;;  %s1783_s18 = scalar_lea.hbm %s2360_s0, 4096 }
  0xa3   : > { %p1779_p12 = scmp.ne.s32.totalorder %s2163_s22, %s1778_s9  ;;  %p1780_p8 = pneg %p2169_p11 }
  0xa4   : > { %p1784_p1 = scmp.lt.u32.totalorder %s2163_s22, %s2360_s0  ;;  %p1785_p3 = scmp.lt.u32.totalorder %s1783_s18, %s1778_s9 }
  0xa5   : > { %p1781_p13 = pnand %p1780_p8, %p1779_p12  ;;  %p1787_p5 = scmp.lt.u32.totalorder %s1778_s9, %s2163_s22 }
  0xa6   : > { %p1786_p2 = por %p1785_p3, %p1784_p1 }
  0xa7   : > { %p1782_p0 = pneg %p1781_p13 }
  0xa8   : > { %p1788_p7 = por %p1787_p5, %p1786_p2 }
  0xaa   : > { %p1789_p9 = pnand %p1788_p7, %p1782_p0 }
  0xac   : > { %1792 = shalt.err (!%p1789_p9)
}
  0xad   : > { %s1793_s20 = scalar_lea.vmem %s2165_s12, 2048  ;;  %s1896_s13 = smov [#allocation2]  }
  0xae   : > { %p1794_p12 = scmp.ne.s32.totalorder %s2165_s12, %s1793_s20  ;;  %s1798_s14 = sshll.u32 %s1896_s13, 4  ;;  %s1799_s14 = int_to_ptr.vmem [resolvable:$false] %s1798_s14 }
  0xaf   : > { %s1800_s29 = scalar_lea.vmem %s1799_s14, 4096  ;;  %p1801_p4 = scmp.lt.s32.totalorder %s2165_s12, %s1799_s14 }
  0xb0   : > { %p1796_p13 = pnand %p1794_p12, %p1780_p8  ;;  %p1802_p1 = scmp.lt.s32.totalorder %s1800_s29, %s1793_s20 }
  0xb2   : > { %p1797_p10 = pneg %p1796_p13  ;;  %p1803_p3 = por %p1802_p1, %p1801_p4 }
  0xb4   : > { %p1804_p2 = pnand %p1803_p3, %p1797_p10 }
  0xb6   : > { %1807 = shalt.err (!%p1804_p2)
}
  0xb7   : > { %s2381_s9 = smov 128   ;;  %p2382_p8 = scmp.ne.s32.totalorder %s2372_s8, 0 }
  0xb8   : > { %1549 = dma.hbm_to_vmem [thread:$0]  (!%p2169_p11), %s2163_s22, 2048, %s2165_s12, %s2173_s23, %s2381_s9, %s2381_s9, %s1892_s28  }
  0xb9   : > { %317 = sbr.rel (%p2382_p8) target bundleno = 932 (0x3a4), region = 48  ;;  %s2207_s18 = sand.u32 (!%p2382_p8), 1, %s1878_s25  }
  0xba   : > { %s1105_s19 = sshll.u32 (!%p2382_p8), %s2207_s18, 7  ;;  %s320_s20 = scalar_lea.sflag (!%p2382_p8), [#allocation3], %s2207_s18 }
  0xbb   : > { %s2213_s16 = scalar_lea.vmem (!%p2382_p8), [#allocation2], %s1105_s19 }
  0xc0   : > { %1853 = dma.done.wait (%p2144_p6), %s320_s20, 2048  }
  0xc1   : > { %1855 = vsyncadd (%p2144_p6), %s320_s20, 4294965248  ;;  %p2383_p4 = scmp.eq.s32.totalorder %s1961_s30, 0 }
  0xc3   : > { %1857 = dma.done.wait (%p2383_p4), [#allocation6], 2064   ;;  %p2384_p10 = pmov %p2383_p4 }
  0xc4   : > { %p2385_p11 = pmov %p2383_p4 }
  0xc5   : > { %1859 = vsyncadd (%p2384_p10), [#allocation6], 4294965232 }
  0xc6   : > { %1861 = dma.done.wait (%p2385_p11), [#allocation9], 2064   ;;  %p2386_p0 = pmov %p2383_p4 }
  0xc8   : > { %1863 = vsyncadd (%p2386_p0), [#allocation9], 4294965232  ;;  %p2387_p5 = pmov %p2386_p0 }
  0xc9   : > { %p2388_p7 = pmov %p2386_p0 }
  0xca   : > { %1865 = dma.done.wait (%p2387_p5), [#allocation12], 2064  }
  0xcb   : > { %1867 = vsyncadd (%p2388_p7), [#allocation12], 4294965232  ;;  %v396_v0 = vld [vmem:[#allocation5] sm:$0xff]  ;;  %v397_v1 = vld [vmem:[#allocation5 + $0x8] sm:$0xff]  ;;  %s2291_s8 = scalar_lea.vmem [#allocation14], %s1105_s19  ;;  %s1122_s23 = sshll.u32 %s1961_s30, 11 }
  0xcc   : > { %v398_v2 = vld [vmem:[#allocation5 + $0x10] sm:$0xff]  ;;  %v1387_v3 = vpack.c.bf16 %v397_v1, %v396_v0  ;;  %v399_v4 = vld [vmem:[#allocation5 + $0x18] sm:$0xff]  ;;  %v400_v6 = vld [vmem:[#allocation5 + $0x20] sm:$0xff]  ;;  %s962_s28 = sshll.u32 %s2291_s8, 4  ;;  %s2312_s12 = scalar_lea.hbm %s2367_s7, %s1122_s23  ;;  %s2314_s28 = int_to_ptr.vmem [resolvable:$true] %s962_s28 }
  0xcd   : > { %v1391_v5 = vpack.c.bf16 %v399_v4, %v398_v2  ;;  %v401_v7 = vld [vmem:[#allocation5 + $0x28] sm:$0xff]  ;;  %v380_v9 = vld [vmem:[%s2213_s16] sm:$0xff]  ;;  %v402_v10 = vld [vmem:[#allocation5 + $0x30] sm:$0xff]  ;;  %s949_s30 = scalar_lea.sflag [#allocation4], %s2207_s18  ;;  %s1808_s13 = scalar_lea.vmem %s2314_s28, 2048 }
  0xce   : > { %1388 = vmatprep.subr.bf16.mxu0 %v1387_v3  ;;  %v1395_v8 = vpack.c.bf16 %v401_v7, %v400_v6  ;;  %v403_v11 = vld [vmem:[#allocation5 + $0x38] sm:$0xff]  ;;  %1251 = vmatprep.mubr.f32.mxu0 %v380_v9  ;;  %v404_v13 = vld [vmem:[#allocation5 + $0x40] sm:$0xff]  ;;  %v405_v14 = vld [vmem:[#allocation5 + $0x48] sm:$0xff]  ;;  %p1809_p6 = scmp.ne.s32.totalorder %s2314_s28, %s1808_s13  ;;  %p2389_p9 = scmp.ne.s32.totalorder %s2378_s10, 0 }
  0xcf   : > { %1390 = vmatpush3.bf16.msra.mxu0 %v1387_v3  ;;  %v1399_v12 = vpack.c.bf16 %v403_v11, %v402_v10  ;;  %v580_v15 = vld [vmem:[#allocation8] sm:$0xff]  ;;  %v581_v16 = vld [vmem:[#allocation8 + $0x8] sm:$0xff]  ;;  %v582_v17 = vld [vmem:[#allocation8 + $0x10] sm:$0xff]  ;;  %v1403_v21 = vpack.c.bf16 %v405_v14, %v404_v13  ;;  %s1897_s14 = smov [#allocation14]  }
  0xd0   : > { %1392 = vmatprep.subr.bf16.mxu0 %v1391_v5  ;;  %v583_v18 = vld [vmem:[#allocation8 + $0x18] sm:$0xff]  ;;  %v1419_v19 = vpack.c.bf16 %v581_v16, %v580_v15  ;;  %v584_v22 = vld [vmem:[#allocation8 + $0x20] sm:$0xff]  ;;  %v585_v23 = vld [vmem:[#allocation8 + $0x28] sm:$0xff]  ;;  %p1810_p12 = pnand %p1809_p6, %p2389_p9  ;;  %s1812_s29 = sshll.u32 %s1897_s14, 4  ;;  %s1813_s29 = int_to_ptr.vmem [resolvable:$false] %s1812_s29 }
  0xd1   : > { %v1423_v20 = vpack.c.bf16 %v583_v18, %v582_v17  ;;  %v406_v24 = vld [vmem:[#allocation5 + $0x50] sm:$0xff]  ;;  %v407_v25 = vld [vmem:[#allocation5 + $0x58] sm:$0xff]  ;;  %v1427_v26 = vpack.c.bf16 %v585_v23, %v584_v22  ;;  %v408_v30 = vld [vmem:[#allocation5 + $0x60] sm:$0xff]  ;;  %s1814_s9 = scalar_lea.vmem %s1813_s29, 4096  ;;  %p1815_p1 = scmp.lt.s32.totalorder %s2314_s28, %s1813_s29 }
  0xd2   : > { %1420 = vmatprep.subr.bf16.mxu1 %v1419_v19  ;;  %v1407_v27 = vpack.c.bf16 %v407_v25, %v406_v24  ;;  %v586_v28 = vld [vmem:[#allocation8 + $0x30] sm:$0xff]  ;;  %v587_v29 = vld [vmem:[#allocation8 + $0x38] sm:$0xff]  ;;  %v409_v31 = vld [vmem:[#allocation5 + $0x68] sm:$0xff]  ;;  %p1811_p13 = pneg %p1810_p12  ;;  %p1816_p3 = scmp.lt.s32.totalorder %s1814_s9, %s1808_s13 }
  0xd3   : > { %1394 = vmatpush3.bf16.msra.mxu0 %v1391_v5  ;;  %1422 = vmatpush3.bf16.msra.mxu1 %v1419_v19  ;;  %v1431_v32 = vpack.c.bf16 %v587_v29, %v586_v28  ;;  %v1411_v33 = vpack.c.bf16 %v409_v31, %v408_v30  ;;  %v588_v34 = vld [vmem:[#allocation8 + $0x40] sm:$0xff]  ;;  %v589_v35 = vld [vmem:[#allocation8 + $0x48] sm:$0xff]  ;;  %v411_v37 = vld [vmem:[#allocation5 + $0x78] sm:$0xff] }
  0xd4   : > { %1396 = vmatprep.subr.bf16.mxu0 %v1395_v8  ;;  %1424 = vmatprep.subr.bf16.mxu1 %v1423_v20  ;;  %v410_v36 = vld [vmem:[#allocation5 + $0x70] sm:$0xff]  ;;  %v1435_v38 = vpack.c.bf16 %v589_v35, %v588_v34  ;;  %v591_v41 = vld [vmem:[#allocation8 + $0x58] sm:$0xff]  ;;  %v592_v43 = vld [vmem:[#allocation8 + $0x60] sm:$0xff]  ;;  %p1817_p2 = por %p1816_p3, %p1815_p1 }
  0xd5   : > { %v1415_v39 = vpack.c.bf16 %v411_v37, %v410_v36  ;;  %v590_v40 = vld [vmem:[#allocation8 + $0x50] sm:$0xff]  ;;  %v593_v44 = vld [vmem:[#allocation8 + $0x68] sm:$0xff]  ;;  %v384_v49 = vld [vmem:[%s2213_s16 + $0x20] sm:$0xff] }
  0xd6   : > { %v1439_v42 = vpack.c.bf16 %v591_v41, %v590_v40  ;;  %v381_v45 = vld [vmem:[%s2213_s16 + $0x8] sm:$0xff]  ;;  %v1443_v46 = vpack.c.bf16 %v593_v44, %v592_v43  ;;  %v382_v47 = vld [vmem:[%s2213_s16 + $0x10] sm:$0xff]  ;;  %v383_v48 = vld [vmem:[%s2213_s16 + $0x18] sm:$0xff]  ;;  %p1818_p8 = pnand %p1817_p2, %p1811_p13 }
  0xd7   : > { %1398 = vmatpush3.bf16.msra.mxu0 %v1395_v8  ;;  %1426 = vmatpush3.bf16.msra.mxu1 %v1423_v20  ;;  %v385_v50 = vld [vmem:[%s2213_s16 + $0x28] sm:$0xff]  ;;  %v386_v51 = vld [vmem:[%s2213_s16 + $0x30] sm:$0xff]  ;;  %v387_v52 = vld [vmem:[%s2213_s16 + $0x38] sm:$0xff] }
  0xd8   : > { %1400 = vmatprep.subr.bf16.mxu0 %v1399_v12  ;;  %1428 = vmatprep.subr.bf16.mxu1 %v1427_v26  ;;  %v388_v53 = vld [vmem:[%s2213_s16 + $0x40] sm:$0xff]  ;;  %v389_v54 = vld [vmem:[%s2213_s16 + $0x48] sm:$0xff]  ;;  %v390_v55 = vld [vmem:[%s2213_s16 + $0x50] sm:$0xff] }
  0xd9   : > { %v391_v56 = vld [vmem:[%s2213_s16 + $0x58] sm:$0xff]  ;;  %v392_v57 = vld [vmem:[%s2213_s16 + $0x60] sm:$0xff]  ;;  %v393_v58 = vld [vmem:[%s2213_s16 + $0x68] sm:$0xff] }
  0xda   : > { %v394_v59 = vld [vmem:[%s2213_s16 + $0x70] sm:$0xff]  ;;  %v395_v60 = vld [vmem:[%s2213_s16 + $0x78] sm:$0xff]  ;;  %v764_v0 = vld [vmem:[#allocation11] sm:$0xff] }
  0xdb   : > { %1402 = vmatpush3.bf16.msra.mxu0 %v1399_v12  ;;  %1430 = vmatpush3.bf16.msra.mxu1 %v1427_v26  ;;  %v594_v61 = vld [vmem:[#allocation8 + $0x70] sm:$0xff]  ;;  %v595_v62 = vld [vmem:[#allocation8 + $0x78] sm:$0xff]  ;;  %v768_v6 = vld [vmem:[#allocation11 + $0x20] sm:$0xff] }
  0xdc   : > { %1404 = vmatprep.subr.bf16.mxu0 %v1403_v21  ;;  %1432 = vmatprep.subr.bf16.mxu1 %v1431_v32  ;;  %v1447_v63 = vpack.c.bf16 %v595_v62, %v594_v61  ;;  %v765_v1 = vld [vmem:[#allocation11 + $0x8] sm:$0xff]  ;;  %v766_v2 = vld [vmem:[#allocation11 + $0x10] sm:$0xff]  ;;  %v767_v4 = vld [vmem:[#allocation11 + $0x18] sm:$0xff] }
  0xdd   : > { %v1451_v3 = vpack.c.bf16 %v765_v1, %v764_v0  ;;  %v1455_v5 = vpack.c.bf16 %v767_v4, %v766_v2  ;;  %v769_v7 = vld [vmem:[#allocation11 + $0x28] sm:$0xff]  ;;  %v770_v9 = vld [vmem:[#allocation11 + $0x30] sm:$0xff]  ;;  %v771_v10 = vld [vmem:[#allocation11 + $0x38] sm:$0xff] }
  0xde   : > { %v1459_v8 = vpack.c.bf16 %v769_v7, %v768_v6  ;;  %v2247_v11 = vpack.c.bf16 %v771_v10, %v770_v9  ;;  %v772_v12 = vld [vmem:[#allocation11 + $0x40] sm:$0xff]  ;;  %v773_v13 = vld [vmem:[#allocation11 + $0x48] sm:$0xff]  ;;  %v774_v15 = vld [vmem:[#allocation11 + $0x50] sm:$0xff] }
  0xdf   : > { %1406 = vmatpush3.bf16.msra.mxu0 %v1403_v21  ;;  %1434 = vmatpush3.bf16.msra.mxu1 %v1431_v32  ;;  %v2250_v14 = vpack.c.bf16 %v773_v13, %v772_v12  ;;  %v775_v16 = vld [vmem:[#allocation11 + $0x58] sm:$0xff]  ;;  %v776_v18 = vld [vmem:[#allocation11 + $0x60] sm:$0xff]  ;;  %v777_v19 = vld [vmem:[#allocation11 + $0x68] sm:$0xff] }
  0xe0   : > { %1408 = vmatprep.subr.bf16.mxu0 %v1407_v27  ;;  %1436 = vmatprep.subr.bf16.mxu1 %v1435_v38  ;;  %v2254_v17 = vpack.c.bf16 %v775_v16, %v774_v15  ;;  %v2258_v20 = vpack.c.bf16 %v777_v19, %v776_v18  ;;  %v2263_v21 = vld [vmem:[#allocation7] ss:$0 sm:$0xff]  ;;  %v778_v6 = vld [vmem:[#allocation11 + $0x70] sm:$0xff]  ;;  %v1114_v9 = vld [vmem:[#allocation10] ss:$0 sm:$0xff] }
  0xe1   : > { %v779_v7 = vld [vmem:[#allocation11 + $0x78] sm:$0xff] }
  0xe3   : > { %1410 = vmatpush3.bf16.msra.mxu0 %v1407_v27  ;;  %1438 = vmatpush3.bf16.msra.mxu1 %v1435_v38 }
  0xe4   : > { %1412 = vmatprep.subr.bf16.mxu0 %v1411_v33  ;;  %1440 = vmatprep.subr.bf16.mxu1 %v1439_v42 }
  0xe7   : > { %1414 = vmatpush3.bf16.msra.mxu0 %v1411_v33  ;;  %1442 = vmatpush3.bf16.msra.mxu1 %v1439_v42 }
  0xe8   : > { %1416 = vmatprep.subr.bf16.mxu0 %v1415_v39  ;;  %1444 = vmatprep.subr.bf16.mxu1 %v1443_v46 }
  0xeb   : > { %1418 = vmatpush3.bf16.msra.mxu0 %v1415_v39  ;;  %1446 = vmatpush3.bf16.msra.mxu1 %v1443_v46 }
  0xec   : > { %1448 = vmatprep.subr.bf16.mxu1 %v1447_v63  ;;  %1452 = vmatprep.subr.bf16.mxu0 %v1451_v3 }
  0xee   : > { %1252 = vmatmul.mubr.f32.vlgmr.msra.gmra.mrb[0].mxu0 %v381_v45 }
  0xef   : > { %1254 = vmatprep.mubr.f32.mxu0 %v382_v47  ;;  %1450 = vmatpush3.bf16.msra.mxu1 %v1447_v63 }
  0xf0   : > { %1483 = vmatprep.subr.bf16.mxu1 %v1451_v3  ;;  %1454 = vmatpush3.bf16.msra.mxu0 %v1451_v3 }
  0xf1   : > { %1456 = vmatprep.subr.bf16.mxu0 %v1455_v5 }
  0xf2   : > { %1255 = vmatmul.mubr.f32.gmra.mrb[2].mxu0 %v383_v48 }
  0xf3   : > { %1257 = vmatprep.mubr.f32.mxu0 %v384_v49 }
  0xf4   : > { %1458 = vmatpush3.bf16.msra.mxu0 %v1455_v5 }
  0xf5   : > { %1460 = vmatprep.subr.bf16.mxu0 %v1459_v8 }
  0xf6   : > { %1258 = vmatmul.mubr.f32.gmra.mrb[4].mxu0 %v385_v50 }
  0xf7   : > { %1260 = vmatprep.mubr.f32.mxu0 %v386_v51 }
  0xf8   : > { %1462 = vmatpush3.bf16.msra.mxu0 %v1459_v8 }
  0xf9   : > { %1464 = vmatprep.subr.bf16.mxu0 %v2247_v11 }
  0xfa   : > { %1261 = vmatmul.mubr.f32.gmra.mrb[6].mxu0 %v387_v52 }
  0xfb   : > { %1263 = vmatprep.mubr.f32.mxu0 %v388_v53 }
  0xfc   : > { %1466 = vmatpush3.bf16.msra.mxu0 %v2247_v11 }
  0xfd   : > { %1468 = vmatprep.subr.bf16.mxu0 %v2250_v14 }
  0xfe   : > { %1264 = vmatmul.mubr.f32.gmra.mrb[8].mxu0 %v389_v54 }
  0xff   : > { %1266 = vmatprep.mubr.f32.mxu0 %v390_v55 }
 0x100   : > { %1470 = vmatpush3.bf16.msra.mxu0 %v2250_v14 }
 0x101   : > { %1472 = vmatprep.subr.bf16.mxu0 %v2254_v17 }
 0x102   : > { %1267 = vmatmul.mubr.f32.gmra.mrb[10].mxu0 %v391_v56 }
 0x103   : > { %1269 = vmatprep.mubr.f32.mxu0 %v392_v57 }
 0x104   : > { %1474 = vmatpush3.bf16.msra.mxu0 %v2254_v17 }
 0x105   : > { %1476 = vmatprep.subr.bf16.mxu0 %v2258_v20 }
 0x106   : > { %1270 = vmatmul.mubr.f32.gmra.mrb[12].mxu0 %v393_v58 }
 0x107   : > { %1272 = vmatprep.mubr.f32.mxu0 %v394_v59 }
 0x108   : > { %1478 = vmatpush3.bf16.msra.mxu0 %v2258_v20 }
 0x10a   : > { %1273 = vmatmul.mubr.f32.gmra.mrb[14].mxu0 %v395_v60 }
 0x1c1   : > { %v1253_v22 = vpop.f32.mrb[0].mxu0 }
 0x1c2   : > { %v491_v23 = vadd.f32 %v1253_v22, %v2263_v21  ;;  %v485_v24 = vpop.f32.mrb[1].mxu0 }
 0x1c3   : > { %v486_v25 = vadd.f32 %v2263_v21, %v485_v24 }
 0x1c4   : > { %v565_v28 = vmax.f32 %v491_v23, 0.0 }
 0x1c5   : > { %v1256_v26 = vpop.f32.mrb[2].mxu0  ;;  %v564_v27 = vmax.f32 %v486_v25, 0.0 }
 0x1c6   : > { %v501_v29 = vadd.f32 %v1256_v26, %v2263_v21  ;;  %v495_v30 = vpop.f32.mrb[3].mxu0 }
 0x1c7   : > { %v496_v31 = vadd.f32 %v2263_v21, %v495_v30  ;;  %1307 = vmatprep.mubr.f32.mxu1 %v564_v27 }
 0x1c8   : > { %1308 = vmatmul.mubr.f32.vlgmr.msra.gmra.mrb[0].mxu1 %v565_v28  ;;  %v567_v34 = vmax.f32 %v501_v29, 0.0 }
 0x1c9   : > { %v566_v32 = vmax.f32 %v496_v31, 0.0  ;;  %v1259_v33 = vpop.f32.mrb[4].mxu0  ;;  %1491 = vmatpush3.bf16.msra.mxu1 %v1451_v3 }
 0x1ca   : > { %v511_v35 = vadd.f32 %v1259_v33, %v2263_v21  ;;  %v505_v36 = vpop.f32.mrb[5].mxu0  ;;  %1484 = vmatprep.subr.bf16.mxu1 %v1455_v5 }
 0x1cb   : > { %v506_v37 = vadd.f32 %v2263_v21, %v505_v36  ;;  %1310 = vmatprep.mubr.f32.mxu1 %v566_v32 }
 0x1cc   : > { %1311 = vmatmul.mubr.f32.gmra.mrb[2].mxu1 %v567_v34  ;;  %v569_v40 = vmax.f32 %v511_v35, 0.0 }
 0x1cd   : > { %v568_v38 = vmax.f32 %v506_v37, 0.0  ;;  %v1262_v39 = vpop.f32.mrb[6].mxu0  ;;  %1492 = vmatpush3.bf16.msra.mxu1 %v1455_v5 }
 0x1ce   : > { %v521_v41 = vadd.f32 %v1262_v39, %v2263_v21  ;;  %v515_v42 = vpop.f32.mrb[7].mxu0  ;;  %1485 = vmatprep.subr.bf16.mxu1 %v1459_v8 }
 0x1cf   : > { %v516_v43 = vadd.f32 %v2263_v21, %v515_v42  ;;  %1313 = vmatprep.mubr.f32.mxu1 %v568_v38 }
 0x1d0   : > { %1314 = vmatmul.mubr.f32.gmra.mrb[4].mxu1 %v569_v40  ;;  %v571_v46 = vmax.f32 %v521_v41, 0.0 }
 0x1d1   : > { %v570_v44 = vmax.f32 %v516_v43, 0.0  ;;  %v1265_v45 = vpop.f32.mrb[8].mxu0  ;;  %1493 = vmatpush3.bf16.msra.mxu1 %v1459_v8  ;;  %v1479_v8 = vpack.c.bf16 %v779_v7, %v778_v6 }
 0x1d2   : > { %v531_v47 = vadd.f32 %v1265_v45, %v2263_v21  ;;  %v525_v48 = vpop.f32.mrb[9].mxu0  ;;  %1486 = vmatprep.subr.bf16.mxu1 %v2247_v11 }
 0x1d3   : > { %v526_v49 = vadd.f32 %v2263_v21, %v525_v48  ;;  %1316 = vmatprep.mubr.f32.mxu1 %v570_v44  ;;  %1480 = vmatprep.subr.bf16.mxu0 %v1479_v8 }
 0x1d4   : > { %1317 = vmatmul.mubr.f32.gmra.mrb[6].mxu1 %v571_v46  ;;  %v573_v52 = vmax.f32 %v531_v47, 0.0  ;;  %1482 = vmatpush3.bf16.msra.mxu0 %v1479_v8 }
 0x1d5   : > { %v572_v50 = vmax.f32 %v526_v49, 0.0  ;;  %v1268_v51 = vpop.f32.mrb[10].mxu0  ;;  %1494 = vmatpush3.bf16.msra.mxu1 %v2247_v11 }
 0x1d6   : > { %v541_v53 = vadd.f32 %v1268_v51, %v2263_v21  ;;  %v535_v54 = vpop.f32.mrb[11].mxu0  ;;  %1487 = vmatprep.subr.bf16.mxu1 %v2250_v14 }
 0x1d7   : > { %v536_v55 = vadd.f32 %v2263_v21, %v535_v54  ;;  %1319 = vmatprep.mubr.f32.mxu1 %v572_v50 }
 0x1d8   : > { %1320 = vmatmul.mubr.f32.gmra.mrb[8].mxu1 %v573_v52  ;;  %v575_v58 = vmax.f32 %v541_v53, 0.0 }
 0x1d9   : > { %v574_v56 = vmax.f32 %v536_v55, 0.0  ;;  %v1271_v57 = vpop.f32.mrb[12].mxu0  ;;  %1495 = vmatpush3.bf16.msra.mxu1 %v2250_v14 }
 0x1da   : > { %v551_v59 = vadd.f32 %v1271_v57, %v2263_v21  ;;  %v545_v60 = vpop.f32.mrb[13].mxu0  ;;  %1488 = vmatprep.subr.bf16.mxu1 %v2254_v17 }
 0x1db   : > { %v546_v61 = vadd.f32 %v2263_v21, %v545_v60  ;;  %1322 = vmatprep.mubr.f32.mxu1 %v574_v56 }
 0x1dc   : > { %1323 = vmatmul.mubr.f32.gmra.mrb[10].mxu1 %v575_v58  ;;  %v577_v0 = vmax.f32 %v551_v59, 0.0  ;;  %v1115_v58 = vld [vmem:[#allocation13] ss:$0 sm:$0xff] }
 0x1dd   : > { %v576_v62 = vmax.f32 %v546_v61, 0.0  ;;  %v1274_v63 = vpop.f32.mrb[14].mxu0  ;;  %1496 = vmatpush3.bf16.msra.mxu1 %v2254_v17 }
 0x1de   : > { %v561_v1 = vadd.f32 %v1274_v63, %v2263_v21  ;;  %v555_v2 = vpop.f32.mrb[15].mxu0  ;;  %1489 = vmatprep.subr.bf16.mxu1 %v2258_v20 }
 0x1df   : > { %v556_v3 = vadd.f32 %v2263_v21, %v555_v2  ;;  %1325 = vmatprep.mubr.f32.mxu1 %v576_v62 }
 0x1e0   : > { %1326 = vmatmul.mubr.f32.gmra.mrb[12].mxu1 %v577_v0  ;;  %v579_v5 = vmax.f32 %v561_v1, 0.0 }
 0x1e1   : > { %v578_v4 = vmax.f32 %v556_v3, 0.0  ;;  %1497 = vmatpush3.bf16.msra.mxu1 %v2258_v20 }
 0x1e2   : > { %1490 = vmatprep.subr.bf16.mxu1 %v1479_v8 }
 0x1e3   : > { %1328 = vmatprep.mubr.f32.mxu1 %v578_v4 }
 0x1e4   : > { %1329 = vmatmul.mubr.f32.gmra.mrb[14].mxu1 %v579_v5 }
 0x1e5   : > { %1498 = vmatpush3.bf16.msra.mxu1 %v1479_v8 }
 0x29b   : > { %v1309_v10 = vpop.f32.mrb[0].mxu1 }
 0x29c   : > { %v675_v11 = vadd.f32 %v1309_v10, %v1114_v9  ;;  %v669_v12 = vpop.f32.mrb[1].mxu1 }
 0x29d   : > { %v670_v13 = vadd.f32 %v1114_v9, %v669_v12 }
 0x29e   : > { %v749_v16 = vmax.f32 %v675_v11, 0.0 }
 0x29f   : > { %v748_v14 = vmax.f32 %v670_v13, 0.0  ;;  %v1312_v15 = vpop.f32.mrb[2].mxu1 }
 0x2a0   : > { %v685_v17 = vadd.f32 %v1312_v15, %v1114_v9  ;;  %v679_v18 = vpop.f32.mrb[3].mxu1 }
 0x2a1   : > { %v680_v19 = vadd.f32 %v1114_v9, %v679_v18  ;;  %1363 = vmatprep.mubr.f32.mxu0 %v748_v14 }
 0x2a2   : > { %1364 = vmatmul.mubr.f32.vlgmr.msra.gmra.mrb[16].mxu0 %v749_v16  ;;  %v751_v22 = vmax.f32 %v685_v17, 0.0 }
 0x2a3   : > { %v750_v20 = vmax.f32 %v680_v19, 0.0  ;;  %v1315_v21 = vpop.f32.mrb[4].mxu1 }
 0x2a4   : > { %v695_v23 = vadd.f32 %v1315_v21, %v1114_v9  ;;  %v689_v24 = vpop.f32.mrb[5].mxu1 }
 0x2a5   : > { %v690_v25 = vadd.f32 %v1114_v9, %v689_v24  ;;  %1366 = vmatprep.mubr.f32.mxu0 %v750_v20 }
 0x2a6   : > { %1367 = vmatmul.mubr.f32.gmra.mrb[18].mxu0 %v751_v22  ;;  %v753_v28 = vmax.f32 %v695_v23, 0.0 }
 0x2a7   : > { %v752_v26 = vmax.f32 %v690_v25, 0.0  ;;  %v1318_v27 = vpop.f32.mrb[6].mxu1 }
 0x2a8   : > { %v705_v29 = vadd.f32 %v1318_v27, %v1114_v9  ;;  %v699_v30 = vpop.f32.mrb[7].mxu1 }
 0x2a9   : > { %v700_v31 = vadd.f32 %v1114_v9, %v699_v30  ;;  %1369 = vmatprep.mubr.f32.mxu0 %v752_v26 }
 0x2aa   : > { %1370 = vmatmul.mubr.f32.gmra.mrb[20].mxu0 %v753_v28  ;;  %v755_v34 = vmax.f32 %v705_v29, 0.0 }
 0x2ab   : > { %v754_v32 = vmax.f32 %v700_v31, 0.0  ;;  %v1321_v33 = vpop.f32.mrb[8].mxu1 }
 0x2ac   : > { %v715_v35 = vadd.f32 %v1321_v33, %v1114_v9  ;;  %v709_v36 = vpop.f32.mrb[9].mxu1 }
 0x2ad   : > { %v710_v37 = vadd.f32 %v1114_v9, %v709_v36  ;;  %1372 = vmatprep.mubr.f32.mxu0 %v754_v32 }
 0x2ae   : > { %1373 = vmatmul.mubr.f32.gmra.mrb[22].mxu0 %v755_v34  ;;  %v757_v40 = vmax.f32 %v715_v35, 0.0 }
 0x2af   : > { %v756_v38 = vmax.f32 %v710_v37, 0.0  ;;  %v1324_v39 = vpop.f32.mrb[10].mxu1 }
 0x2b0   : > { %v725_v41 = vadd.f32 %v1324_v39, %v1114_v9  ;;  %v719_v42 = vpop.f32.mrb[11].mxu1 }
 0x2b1   : > { %v720_v43 = vadd.f32 %v1114_v9, %v719_v42  ;;  %1375 = vmatprep.mubr.f32.mxu1 %v756_v38 }
 0x2b2   : > { %1376 = vmatmul.mubr.f32.vlgmr.msra.gmra.mrb[16].mxu1 %v757_v40  ;;  %v759_v46 = vmax.f32 %v725_v41, 0.0 }
 0x2b3   : > { %v758_v44 = vmax.f32 %v720_v43, 0.0  ;;  %v1327_v45 = vpop.f32.mrb[12].mxu1 }
 0x2b4   : > { %v735_v47 = vadd.f32 %v1327_v45, %v1114_v9  ;;  %v729_v48 = vpop.f32.mrb[13].mxu1 }
 0x2b5   : > { %v730_v49 = vadd.f32 %v1114_v9, %v729_v48  ;;  %1378 = vmatprep.mubr.f32.mxu1 %v758_v44 }
 0x2b6   : > { %1379 = vmatmul.mubr.f32.gmra.mrb[18].mxu1 %v759_v46  ;;  %v761_v52 = vmax.f32 %v735_v47, 0.0 }
 0x2b7   : > { %v760_v50 = vmax.f32 %v730_v49, 0.0  ;;  %v1330_v51 = vpop.f32.mrb[14].mxu1 }
 0x2b8   : > { %v745_v53 = vadd.f32 %v1330_v51, %v1114_v9  ;;  %v739_v54 = vpop.f32.mrb[15].mxu1 }
 0x2b9   : > { %v740_v55 = vadd.f32 %v1114_v9, %v739_v54  ;;  %1381 = vmatprep.mubr.f32.mxu1 %v760_v50 }
 0x2ba   : > { %1382 = vmatmul.mubr.f32.gmra.mrb[20].mxu1 %v761_v52  ;;  %v763_v57 = vmax.f32 %v745_v53, 0.0 }
 0x2bb   : > { %v762_v56 = vmax.f32 %v740_v55, 0.0 }
 0x2bd   : > { %1384 = vmatprep.mubr.f32.mxu1 %v762_v56 }
 0x2be   : > { %1385 = vmatmul.mubr.f32.gmra.mrb[22].mxu1 %v763_v57 }
 0x375   : > { %v1365_v59 = vpop.f32.mrb[16].mxu0 }
 0x376   : > { %v859_v60 = vadd.f32 %v1365_v59, %v1115_v58  ;;  %v853_v61 = vpop.f32.mrb[17].mxu0 }
 0x377   : > { %v854_v62 = vadd.f32 %v1115_v58, %v853_v61 }
 0x378   : > { %933 = vst [vmem:[%s2291_s8 + $0x8] sm:$0xff] %v859_v60 }
 0x379   : > { %932 = vst [vmem:[%s2291_s8] sm:$0xff] %v854_v62  ;;  %v1368_v63 = vpop.f32.mrb[18].mxu0 }
 0x37a   : > { %v869_v0 = vadd.f32 %v1368_v63, %v1115_v58  ;;  %v863_v1 = vpop.f32.mrb[19].mxu0 }
 0x37b   : > { %v864_v2 = vadd.f32 %v1115_v58, %v863_v1 }
 0x37c   : > { %935 = vst [vmem:[%s2291_s8 + $0x18] sm:$0xff] %v869_v0 }
 0x37d   : > { %934 = vst [vmem:[%s2291_s8 + $0x10] sm:$0xff] %v864_v2  ;;  %v1371_v3 = vpop.f32.mrb[20].mxu0 }
 0x37e   : > { %v879_v4 = vadd.f32 %v1371_v3, %v1115_v58  ;;  %v873_v5 = vpop.f32.mrb[21].mxu0 }
 0x37f   : > { %v874_v6 = vadd.f32 %v1115_v58, %v873_v5 }
 0x380   : > { %937 = vst [vmem:[%s2291_s8 + $0x28] sm:$0xff] %v879_v4 }
 0x381   : > { %936 = vst [vmem:[%s2291_s8 + $0x20] sm:$0xff] %v874_v6  ;;  %v1374_v7 = vpop.f32.mrb[22].mxu0 }
 0x382   : > { %v889_v8 = vadd.f32 %v1374_v7, %v1115_v58  ;;  %v883_v9 = vpop.f32.mrb[23].mxu0 }
 0x383   : > { %v884_v10 = vadd.f32 %v1115_v58, %v883_v9 }
 0x384   : > { %939 = vst [vmem:[%s2291_s8 + $0x38] sm:$0xff] %v889_v8 }
 0x385   : > { %938 = vst [vmem:[%s2291_s8 + $0x30] sm:$0xff] %v884_v10  ;;  %v1377_v11 = vpop.f32.mrb[16].mxu1 }
 0x386   : > { %v899_v12 = vadd.f32 %v1377_v11, %v1115_v58  ;;  %v893_v13 = vpop.f32.mrb[17].mxu1 }
 0x387   : > { %v894_v14 = vadd.f32 %v1115_v58, %v893_v13 }
 0x388   : > { %941 = vst [vmem:[%s2291_s8 + $0x48] sm:$0xff] %v899_v12 }
 0x389   : > { %940 = vst [vmem:[%s2291_s8 + $0x40] sm:$0xff] %v894_v14  ;;  %v1380_v15 = vpop.f32.mrb[18].mxu1 }
 0x38a   : > { %v909_v16 = vadd.f32 %v1380_v15, %v1115_v58  ;;  %v903_v17 = vpop.f32.mrb[19].mxu1 }
 0x38b   : > { %v904_v18 = vadd.f32 %v1115_v58, %v903_v17 }
 0x38c   : > { %943 = vst [vmem:[%s2291_s8 + $0x58] sm:$0xff] %v909_v16 }
 0x38d   : > { %942 = vst [vmem:[%s2291_s8 + $0x50] sm:$0xff] %v904_v18  ;;  %v1383_v19 = vpop.f32.mrb[20].mxu1 }
 0x38e   : > { %v919_v20 = vadd.f32 %v1383_v19, %v1115_v58  ;;  %v913_v21 = vpop.f32.mrb[21].mxu1 }
 0x38f   : > { %v914_v22 = vadd.f32 %v1115_v58, %v913_v21 }
 0x390   : > { %945 = vst [vmem:[%s2291_s8 + $0x68] sm:$0xff] %v919_v20 }
 0x391   : > { %944 = vst [vmem:[%s2291_s8 + $0x60] sm:$0xff] %v914_v22  ;;  %v1386_v23 = vpop.f32.mrb[22].mxu1 }
 0x392   : > { %v929_v24 = vadd.f32 %v1386_v23, %v1115_v58  ;;  %v923_v25 = vpop.f32.mrb[23].mxu1 }
 0x393   : > { %v924_v26 = vadd.f32 %v1115_v58, %v923_v25 }
 0x394   : > { %947 = vst [vmem:[%s2291_s8 + $0x78] sm:$0xff] %v929_v24 }
 0x395   : > { %946 = vst [vmem:[%s2291_s8 + $0x70] sm:$0xff] %v924_v26 }
 0x396   : > { %1821 = shalt.err (!%p1818_p8)
}
 0x397   : > { %s1822_s19 = scalar_lea.hbm %s2312_s12, 2048  ;;  %s1826_s8 = scalar_lea.hbm %s2367_s7, 4096 }
 0x398   : > { %p1823_p4 = scmp.ne.s32.totalorder %s2312_s12, %s1822_s19  ;;  %p1827_p0 = scmp.lt.u32.totalorder %s2312_s12, %s2367_s7 }
 0x399   : > { %p1828_p5 = scmp.lt.u32.totalorder %s1826_s8, %s1822_s19  ;;  %p1830_p6 = scmp.lt.u32.totalorder %s1822_s19, %s2312_s12 }
 0x39a   : > { %p1824_p10 = pnand %p1823_p4, %p2389_p9 }
 0x39b   : > { %p1829_p7 = por %p1828_p5, %p1827_p0 }
 0x39c   : > { %p1825_p11 = pneg %p1824_p10 }
 0x39d   : > { %p1831_p12 = por %p1830_p6, %p1829_p7 }
 0x39f   : > { %p1832_p13 = pnand %p1831_p12, %p1825_p11 }
 0x3a1   : > { %1835 = shalt.err (!%p1832_p13)
}
 0x3a2   : > { %s1898_s22 = smov 128   ;;  %s1899_s13 = smov 8  }
 0x3a3   : > { %1525 = dma.vmem_to_hbm [thread:$0]  (%p2389_p9), %s2314_s28, 2048, %s2312_s12, %s949_s30, %s1898_s22, %s1898_s22, %s1899_s13  }
 0x3a4 PF: > { %s977_s14 = sand.u32 1, %s1874_s24   ;;  %p2390_p1 = scmp.ne.s32.totalorder %s2379_s21, 0 }
 0x3a5   : > { %p2391_p3 = scmp.ge.s32.totalorder %s1886_s27, 2  ;;  %s978_s29 = scalar_lea.sflag [#allocation4], %s977_s14 }
 0x3a7   : > { %p1551_p2 = pnand %p2391_p3, %p2390_p1 }
 0x3a9   : > { %1869 = dma.done.wait (!%p1551_p2), %s978_s29, 2048  }
 0x3aa   : > { %1871 = vsyncadd (!%p1551_p2), %s978_s29, 4294965248  ;;  %p23_p8 = scmp.ge.s32.totalorder %s2125_s11, 4   ;;  %s2392_s24 = smov %s1878_s25 }
 0x3ab   : > { %s2393_s25 = smov %s1882_s26  ;;  %s2394_s26 = smov %s2136_s17 }
 0x3ac   : > { %s2395_s27 = smov %s2125_s11  ;;  %25 = sbr.rel (!%p23_p8) target bundleno = 8 (0x8), region = 117 }
 0x3b3   :  { %983 = vsyncpa [#allocation3], 1 }
 0x3b4   :  { %985 = vsyncpa [#allocation3 + $0x1], 1 }
 0x3b5   :  { %986 = vsyncpa [#allocation6], 1 }
 0x3b6   :  { %987 = vsyncpa [#allocation9], 1 }
 0x3b7   :  { %988 = vsyncpa [#allocation12], 1 }
 0x3b8   :  { %989 = vsyncpa [#allocation4], 1 }
 0x3b9   :  { %991 = vsyncpa [#allocation4 + $0x1], 1 }

</bundles_post_ra>
